<compile_context>
chip_gen: v5e
topology: v5e:2x2
jax: 0.10.0
libtpu: 0.0.40
codegen_flags: <defaults>
</compile_context>

<pallas_src>
import math

import jax
import jax.numpy as jnp
from jax.experimental import pallas as pl
from jax.experimental.pallas import tpu as pltpu


def _round_up(x, m):
    return (x + m - 1) // m * m


# ----------------------------------------------------------------------------
# Kernel
# ----------------------------------------------------------------------------
def _linear_kernel(x_ref, w_ref, b_ref, o_ref, acc_ref):
    """One (M, N) output tile, accumulated over the K grid axis.

    x_ref:   (tm, tk)  bf16 activation tile
    w_ref:   (tk, tn)  bf16 weight tile (stored (indim, outdim) -> lane-dense N)
    b_ref:   (1,  tn)  f32 bias tile
    o_ref:   (tm, tn)  output tile
    acc_ref: (tm, tn)  f32 accumulator scratch (persists across K steps)
    """
    k = pl.program_id(2)

    @pl.when(k == 0)
    def _():
        acc_ref[...] = jnp.zeros_like(acc_ref)

    acc_ref[...] += jnp.dot(
        x_ref[...], w_ref[...], preferred_element_type=jnp.float32
    )

    @pl.when(k == pl.num_programs(2) - 1)
    def _():
        o_ref[...] = (acc_ref[...] + b_ref[...]).astype(o_ref.dtype)


# ----------------------------------------------------------------------------
# Wrapper
# ----------------------------------------------------------------------------
def linear_map(x, w_t, b, outdim, *, tm_max=512, tn_max=512):
    """nn.Linear forward.

    x:   (..., indim)
    w_t: (Kp, Np) bf16 weight, pre-transposed and padded (Np = outdim rounded
         up to 128; Kp = indim, or indim rounded up to 512 when indim > 1024)
    b:   (1, Np)  f32 bias (zero-padded)
    """
    *lead, K = x.shape
    Kp, Np = w_t.shape
    out_dtype = x.dtype
    M = int(math.prod(lead)) if lead else 1

    # --- tile selection -----------------------------------------------------
    # N tile: Np is always a multiple of 128 (lane-dense stores).
    if Np <= tn_max:
        tn = Np
    elif Np % 512 == 0:
        tn = 512
    elif Np % 256 == 0:
        tn = 256
    else:
        tn = 128
    n_n = Np // tn

    # K tile: full K when small (block == full dim is always legal), else 512.
    tk = Kp if Kp <= 1024 else 512
    n_k = Kp // tk

    # M tile: adaptive, 16-aligned (bf16 sublane packing); ensure >= 2 parallel
    # grid steps when possible so v7x's two TensorCores both get work.
    M16 = _round_up(max(M, 1), 16)
    n_m = -(-M16 // tm_max)
    if n_m * n_n < 2 and M16 >= 32:
        n_m = 2
    tm = _round_up(-(-M16 // n_m), 16)
    Mp = n_m * tm

    # --- prepare x (single pad at most) -------------------------------------
    x2 = x.reshape(M, K).astype(jnp.bfloat16)
    if Mp != M or Kp != K:
        x2 = jnp.pad(x2, ((0, Mp - M), (0, Kp - K)))

    out_isz = jnp.dtype(out_dtype).itemsize
    cost = pl.CostEstimate(
        flops=2 * Mp * Kp * Np,
        transcendentals=0,
        bytes_accessed=(Mp * Kp + Kp * Np) * 2 + Np * 4 + Mp * Np * out_isz,
    )

    out = pl.pallas_call(
        _linear_kernel,
        out_shape=jax.ShapeDtypeStruct((Mp, Np), out_dtype),
        grid=(n_m, n_n, n_k),
        in_specs=[
            pl.BlockSpec((tm, tk), lambda i, j, k: (i, k)),
            pl.BlockSpec((tk, tn), lambda i, j, k: (k, j)),
            pl.BlockSpec((1, tn), lambda i, j, k: (0, j)),
        ],
        out_specs=pl.BlockSpec((tm, tn), lambda i, j, k: (i, j)),
        scratch_shapes=[pltpu.VMEM((tm, tn), jnp.float32)],
        compiler_params=pltpu.CompilerParams(
            dimension_semantics=("parallel", "parallel", "arbitrary"),
            vmem_limit_bytes=48 * 1024 * 1024,  # safe on v7x's 64 MiB physical
        ),
        cost_estimate=cost,
    )(x2, w_t, b)

    out = out[:M, :outdim]
    return out.reshape(*lead, outdim)


# ----------------------------------------------------------------------------
# Parameters (PyTorch nn.Linear default init, stored in kernel layout)
# ----------------------------------------------------------------------------
def make_params(key, indim, outdim):
    kw, kb = jax.random.split(key)
    bound = 1.0 / (indim ** 0.5)
    # PyTorch stores weight as (outdim, indim); transpose once at prep time.
    w = jax.random.uniform(kw, (outdim, indim), jnp.float32, -bound, bound)
    b = jax.random.uniform(kb, (outdim,), jnp.float32, -bound, bound)

    Np = _round_up(outdim, 128)                              # lane-dense N
    Kp = indim if indim <= 1024 else _round_up(indim, 512)   # K tiling granule

    w_t = jnp.zeros((Kp, Np), jnp.float32).at[:indim, :outdim].set(w.T)
    b_p = jnp.zeros((1, Np), jnp.float32).at[0, :outdim].set(b)
    return dict(w_t=w_t.astype(jnp.bfloat16), b=b_p)


# ----------------------------------------------------------------------------
# Forward
# ----------------------------------------------------------------------------
def linear_map_forward(x, params, outdim):
    return linear_map(x, params["w_t"], params["b"], outdim)


if __name__ == "__main__":
    key = jax.random.PRNGKey(0)
    kx, kp = jax.random.split(key)

    indim, outdim = 32, 64
    # (batch, seq, indim): nn.Linear applies over the last dim of any rank.
    x = jax.random.normal(kx, (4, 16, indim), jnp.float32)
    params = make_params(kp, indim, outdim)

    fwd = jax.jit(linear_map_forward, static_argnums=2)
    y = fwd(x, params, outdim)
    jax.block_until_ready(y)

    # Reference with the same bf16 operands and f32 accumulation (MXU numerics).
    w_f32 = params["w_t"].astype(jnp.float32)[:indim, :outdim]
    x_bf = x.astype(jnp.bfloat16).astype(jnp.float32).reshape(-1, indim)
    ref = (x_bf @ w_f32 + params["b"][0, :outdim]).reshape(4, 16, outdim)

    assert y.shape == (4, 16, outdim) and y.dtype == jnp.float32
    assert jnp.allclose(y, ref, rtol=1e-3, atol=1e-3), float(
        jnp.max(jnp.abs(y - ref))
    )
    print("KERNEL_OK")
</pallas_src>

<mosaic_0001>
module attributes {stable_mosaic.version = 11 : i64} {
  func.func @_linear_kernel(%arg0: i32, %arg1: i32, %arg2: i32, %arg3: memref<32x32xbf16, #tpu.memory_space<vmem>>, %arg4: memref<32x128xbf16, #tpu.memory_space<vmem>>, %arg5: memref<1x128xf32, #tpu.memory_space<vmem>>, %arg6: memref<32x128xf32, #tpu.memory_space<vmem>>, %arg7: memref<32x128xf32, #tpu.memory_space<vmem>>) attributes {dimension_semantics = [#tpu.dimension_semantics<parallel>, #tpu.dimension_semantics<parallel>, #tpu.dimension_semantics<arbitrary>], iteration_bounds = array<i64: 2, 1, 1>, scalar_prefetch = 0 : i64, scratch_operands = 1 : i64, tpu.core_type = #tpu.core_type<tc>, window_params = [{transform_indices = @transform_0, window_bounds = array<i64: 32, 32>}, {transform_indices = @transform_1, window_bounds = array<i64: 32, 128>}, {transform_indices = @transform_2, window_bounds = array<i64: 1, 128>}, {transform_indices = @transform_3, window_bounds = array<i64: 32, 128>}]} {
    %c0_i32 = arith.constant 0 : i32
    %0 = arith.cmpi eq, %arg2, %c0_i32 : i32
    %1 = arith.extui %0 : i1 to i32
    %c0_i32_0 = arith.constant 0 : i32
    %2 = arith.cmpi ne, %1, %c0_i32_0 : i32
    scf.if %2 {
      %cst_10 = arith.constant 0.000000e+00 : f32
      %12 = vector.broadcast %cst_10 : f32 to vector<32x128xf32>
      %c0_11 = arith.constant 0 : index
      %c0_12 = arith.constant 0 : index
      %13 = vector.load %arg7[%c0_11, %c0_12] : memref<32x128xf32, #tpu.memory_space<vmem>>, vector<32x128xf32>
      tpu.vector_store %arg7[%c0_11, %c0_12], %12 {strides = array<i32>} : memref<32x128xf32, #tpu.memory_space<vmem>>, vector<32x128xf32>,
    } else {
    }
    %c0 = arith.constant 0 : index
    %c0_1 = arith.constant 0 : index
    %3 = vector.load %arg7[%c0, %c0_1] : memref<32x128xf32, #tpu.memory_space<vmem>>, vector<32x128xf32>
    %c0_2 = arith.constant 0 : index
    %c0_3 = arith.constant 0 : index
    %4 = vector.load %arg3[%c0_2, %c0_3] : memref<32x32xbf16, #tpu.memory_space<vmem>>, vector<32x32xbf16>
    %c0_4 = arith.constant 0 : index
    %c0_5 = arith.constant 0 : index
    %5 = vector.load %arg4[%c0_4, %c0_5] : memref<32x128xbf16, #tpu.memory_space<vmem>>, vector<32x128xbf16>
    %cst = arith.constant dense<0.000000e+00> : vector<32x128xf32>
    %6 = tpu.matmul %4, %5, %cst {dimension_numbers = #tpu.dot_dimension_numbers<[1], [0], [0], [1], [0, 0, 1, 1], [], []>} : vector<32x32xbf16>, vector<32x128xbf16>, vector<32x128xf32> -> vector<32x128xf32>
    %7 = arith.addf %3, %6 : vector<32x128xf32>
    %c0_6 = arith.constant 0 : index
    %c0_7 = arith.constant 0 : index
    %8 = vector.load %arg7[%c0_6, %c0_7] : memref<32x128xf32, #tpu.memory_space<vmem>>, vector<32x128xf32>
    tpu.vector_store %arg7[%c0_6, %c0_7], %7 {strides = array<i32>} : memref<32x128xf32, #tpu.memory_space<vmem>>, vector<32x128xf32>,
    %c0_i32_8 = arith.constant 0 : i32
    %9 = arith.cmpi eq, %arg2, %c0_i32_8 : i32
    %10 = arith.extui %9 : i1 to i32
    %c0_i32_9 = arith.constant 0 : i32
    %11 = arith.cmpi ne, %10, %c0_i32_9 : i32
    scf.if %11 {
      %c0_10 = arith.constant 0 : index
      %c0_11 = arith.constant 0 : index
      %12 = vector.load %arg7[%c0_10, %c0_11] : memref<32x128xf32, #tpu.memory_space<vmem>>, vector<32x128xf32>
      %c0_12 = arith.constant 0 : index
      %c0_13 = arith.constant 0 : index
      %13 = vector.load %arg5[%c0_12, %c0_13] : memref<1x128xf32, #tpu.memory_space<vmem>>, vector<1x128xf32>
      %14 = vector.broadcast %13 : vector<1x128xf32> to vector<32x128xf32>
      %15 = arith.addf %12, %14 : vector<32x128xf32>
      %c0_14 = arith.constant 0 : index
      %c0_15 = arith.constant 0 : index
      %16 = vector.load %arg6[%c0_14, %c0_15] : memref<32x128xf32, #tpu.memory_space<vmem>>, vector<32x128xf32>
      tpu.vector_store %arg6[%c0_14, %c0_15], %15 {strides = array<i32>} : memref<32x128xf32, #tpu.memory_space<vmem>>, vector<32x128xf32>,
    } else {
    }
    return
  }
  func.func @transform_0(%arg0: i32, %arg1: i32, %arg2: i32) -> (i32, i32) {
    %c0_i32 = arith.constant 0 : i32
    return %arg0, %arg2 : i32, i32
  }
  func.func @transform_1(%arg0: i32, %arg1: i32, %arg2: i32) -> (i32, i32) {
    %c0_i32 = arith.constant 0 : i32
    return %arg2, %arg1 : i32, i32
  }
  func.func @transform_2(%arg0: i32, %arg1: i32, %arg2: i32) -> (i32, i32) {
    %c0_i32 = arith.constant 0 : i32
    %c0_i32_0 = arith.constant 0 : i32
    return %c0_i32, %arg1 : i32, i32
  }
  func.func @transform_3(%arg0: i32, %arg1: i32, %arg2: i32) -> (i32, i32) {
    %c0_i32 = arith.constant 0 : i32
    return %arg0, %arg1 : i32, i32
  }
}

</mosaic_0001>

<bundles_post_ra>
// kernel: linear_map_forward.1
= control target key start
LH: loop header
LB: loop body
LE: loop exit
PB: predicated region body
PF: predicated region fallthrough
CT: control target
= control target key end

     0   :  { %8 = vsyncpa [#allocation4], 0  ;;  %s777_s0 = inlined_call_operand.vmem [shape: bf16[64,32], index: 0, kind: input, shape index: {}]   ;;  %s778_s1 = inlined_call_operand.vmem [shape: bf16[32,128], index: 1, kind: input, shape index: {}]   ;;  %s779_s2 = inlined_call_operand.vmem [shape: f32[1,128], index: 2, kind: input, shape index: {}]   ;;  %s780_s3 = inlined_call_operand.hbm [shape: f32[64,128], index: 3, kind: output, shape index: {}]  }
   0x1   :  { %10 = vsyncpa [#allocation4 + $0x1], 0  ;;  %s672_s12 = smov 0   ;;  %s674_s13 = smov 0  }
   0x2   :  { %s676_s14 = smov 0   ;;  %s678_s15 = smov 0  }
   0x3   :  { %s680_s16 = smov 0   ;;  %s682_s17 = smov 0  }
   0x4 LB: > { %s472_s18 = sadd.s32 4294967295, %s648_s17   ;;  %s473_s19 = sadd.s32 4294967294, %s648_s17   ;;  %s648_s17 = sphi %s682_s17, %s16_s17   ;;  %s644_s16 = sphi %s680_s16, %s787_s16   ;;  %s640_s15 = sphi %s678_s15, %s786_s15   ;;  %s636_s14 = sphi %s676_s14, %s785_s14   ;;  %s632_s13 = sphi %s674_s13, %s784_s13   ;;  %s628_s12 = sphi %s672_s12, %s783_s12  }
   0x5   : > { %s35_s20 = sadd.s32 1, %s644_s16  ;;  %s126_s21 = sadd.s32 1, %s636_s14 }
   0x6   : > { %p37_p0 = scmp.ge.s32.totalorder %s35_s20, 2  ;;  %p136_p1 = scmp.ne.s32.totalorder %s636_s14, %s632_s13 }
   0x7   : > { %p137_p2 = scmp.eq.s32.totalorder %s472_s18, 1  ;;  %p142_p3 = scmp.ne.s32.totalorder %s632_s13, %s628_s12 }
   0x8   : > { %s789_s20 = smov (%p37_p0, %s35_s20), 0  ;;  %p143_p5 = scmp.eq.s32.totalorder %s473_s19, 1 }
   0x9   : > { %p712_p4 = por %p137_p2, %p136_p1  ;;  %s121_s23 = ssub.s32 %s644_s16, %s789_s20 }
   0xa   : > { %p478_p6 = scmp.ge.s32.totalorder %s648_s17, 1  ;;  %p124_p7 = scmp.eq.s32.totalorder %s121_s23, 0 }
   0xb   : > { %p719_p8 = por %p143_p5, %p142_p3  ;;  %p191_p9 = scmp.lt.s32.totalorder %s648_s17, 3 }
   0xc   : > { %s725_s25 = scalar_select %p124_p7, %s636_s14, %s126_s21  }
   0xd   : > { %p192_p10 = pnand %p478_p6, %p191_p9 }
   0xe   : > { %s480_s28 = sshll.u32 (!%p192_p10), %s640_s15, 2  ;;  %s226_s8 = sand.u32 (!%p192_p10), 1, %s632_s13  }
   0xf   : > { %195 = sbr.rel (%p192_p10) target bundleno = 169 (0xa9), region = 32  ;;  %p230_p11 = scmp.lt.s32.totalorder (!%p192_p10), %s480_s28, 7 }
  0x10   : > { %s479_s9 = sshll.u32 (!%p192_p10), %s226_s8, 5  ;;  %s509_s18 = sshll.u32 (!%p192_p10), %s640_s15, 5 }
  0x11   : > { %s228_s19 = scalar_lea.vmem (!%p192_p10), [#allocation3], %s479_s9  ;;  %s360_s26 = scalar_lea.hbm (!%p192_p10), %s780_s3, %s509_s18 }
  0x12   : > { %s361_s27 = sshll.u32 (!%p192_p10), %s228_s19, 4  ;;  %s348_s15 = scalar_lea.sflag (!%p192_p10), [#allocation4], %s226_s8  ;;  %s362_s27 = int_to_ptr.vmem [resolvable:$true] %s361_s27 }
  0x13   : > { %s590_s6 = scalar_lea.hbm (!%p192_p10), %s780_s3, 64 }
  0x14   : > { %v508_v0 = vld [vmem:[%s778_s1 + $0x8] sm:$0xff]  ;;  %v507_v1 = vld [vmem:[%s778_s1] sm:$0xff]  ;;  %s791_s28 = smov (!%p230_p11, %s480_s28), 7  ;;  %vm294_vm0 = vcmask 261120  }
  0x15   : > { %307 = vmatpush.bf16.msra.mxu0 %v508_v0  ;;  %510 = vmatpush.bf16.msra.mxu1 %v508_v0  ;;  %s481_s4 = sshll.u32 %s791_s28, 2  ;;  %v569_v4 = vld [vmem:[%s779_s2] ss:$0 sm:$0xff]  ;;  %s363_s28 = sshll.u32 %s360_s26, 4  ;;  %s364_s28 = int_to_ptr.hbm [resolvable:$true] %s363_s28 }
  0x16   : > { %s236_s7 = scalar_lea.vmem %s777_s0, %s481_s4  ;;  %s584_s29 = sshra.s32 %s364_s28, 4  ;;  %s585_s29 = int_to_ptr.hbm [resolvable:$true] %s584_s29 }
  0x17   : > { %v505_v2 = vld [vmem:[%s236_s7] sm:$0xff]  ;;  %v506_v3 = vld [vmem:[%s236_s7 + $0x8] sm:$0xff]  ;;  %s586_s30 = scalar_lea.hbm %s585_s29, 32  ;;  %p591_p1 = scmp.lt.s32.totalorder %s585_s29, %s780_s3 }
  0x18   : > { %p587_p12 = scmp.ne.s32.totalorder %s585_s29, %s586_s30  ;;  %p592_p2 = scmp.lt.s32.totalorder %s590_s6, %s586_s30 }
  0x19   : > { %308 = vmatpush.bf16.msra.mxu0 %v507_v1  ;;  %511 = vmatpush.bf16.msra.mxu1 %v507_v1 }
  0x1a   : > { %p588_p13 = pnand %p587_p12, %p712_p4  ;;  %p593_p3 = por %p592_p2, %p591_p1 }
  0x1c   : > { %498 = vmatmul.msk.bf16.vlgmr.msra.gmra.mxu0 %vm294_vm0, %v505_v2  ;;  %499 = vmatmul.msk.bf16.vlgmr.msra.gmra.mxu1 %vm294_vm0, %v506_v3  ;;  %p589_p0 = pneg %p588_p13 }
  0x1e   : > { %p594_p5 = pnand %p593_p3, %p589_p0 }
  0x99   : > { %v310_v5 = vpop.f32.mrf.mxu0  ;;  %v315_v6 = vpop.f32.mrf.mxu1 }
  0x9a   : > { %v339_v7 = vadd.f32 %v569_v4, %v310_v5  ;;  %v341_v8 = vadd.f32 %v569_v4, %v315_v6 }
  0x9c   : > { %343 = vst [vmem:[%s228_s19] sm:$0xff] %v339_v7 }
  0x9d   : > { %345 = vst [vmem:[%s228_s19 + $0x10] sm:$0xff] %v341_v8 }
  0xa1   : > { %v312_v9 = vpop.f32.mrf.mxu0  ;;  %v317_v10 = vpop.f32.mrf.mxu1 }
  0xa2   : > { %v340_v11 = vadd.f32 %v569_v4, %v312_v9  ;;  %v342_v12 = vadd.f32 %v569_v4, %v317_v10 }
  0xa4   : > { %344 = vst [vmem:[%s228_s19 + $0x8] sm:$0xff] %v340_v11 }
  0xa5   : > { %346 = vst [vmem:[%s228_s19 + $0x18] sm:$0xff] %v342_v12 }
  0xa6   : > { %597 = shalt.err (!%p594_p5)
}
  0xa7   : > { %s650_s8 = smov 128   ;;  %s651_s10 = smov 8  }
  0xa8   : > { %512 = dma.vmem_to_hbm [thread:$0]  (%p712_p4), %s362_s27, 512, %s364_s28, %s348_s15, %s650_s8, %s650_s8, %s651_s10  }
  0xa9 PF: > { %p518_p6 = scmp.ge.s32.totalorder %s648_s17, 2  ;;  %s378_s11 = sand.u32 1, %s628_s12  }
  0xaa   : > { %s379_s18 = scalar_lea.sflag [#allocation4], %s378_s11 }
  0xab   : > { %p515_p7 = pnand %p518_p6, %p719_p8 }
  0xad   : > { %p516_p9 = pneg %p515_p7 }
  0xaf   : > { %623 = dma.done.wait (%p516_p9), %s379_s18, 512  }
  0xb0   : > { %625 = vsyncadd (%p516_p9), %s379_s18, 4294966784  ;;  %s16_s17 = sadd.s32 1, %s648_s17   ;;  %s783_s12 = smov %s632_s13 }
  0xb1   : > { %p13_p10 = scmp.ge.s32.totalorder %s16_s17, 4   ;;  %s784_s13 = smov %s636_s14 }
  0xb2   : > { %s785_s14 = smov %s725_s25  ;;  %s786_s15 = smov %s644_s16 }
  0xb3   : > { %s787_s16 = smov %s789_s20  ;;  %15 = sbr.rel (!%p13_p10) target bundleno = 4 (0x4), region = 81 }
  0xb8   :  { %385 = vsyncpa [#allocation4], 1 }
  0xb9   :  { %387 = vsyncpa [#allocation4 + $0x1], 1 }

</bundles_post_ra>
